<compile_context>
chip_gen: v5e
topology: v5e:2x2
jax: 0.10.0
libtpu: 0.0.40
codegen_flags: <defaults>
</compile_context>

<pallas_src>
import functools

import jax
import jax.numpy as jnp
from jax.experimental import pallas as pl
from jax.experimental.pallas import tpu as pltpu


# ----------------------------------------------------------------------------
# Kernels
# ----------------------------------------------------------------------------
def _toy_kernel_aligned(p_ref, x_ref, o_ref, *, d):
    """D % 128 == 0 path: o_ref is [TB, 2*D]; both stores lane-aligned."""
    x = x_ref[...]                                   # [TB, D] f32 (VMEM)
    p0, p1, p2, p3 = p_ref[0], p_ref[1], p_ref[2], p_ref[3]   # SMEM scalars
    base = x * p0 + (x * x) * p1                     # same association as torch
    o_ref[:, :d] = p2 * base                         # lane offset 0
    o_ref[:, d:] = p3 * base                         # lane offset d (mult. of 128)


def _toy_kernel_split(p_ref, x_ref, o_ref):
    """General-D path: o_ref is [TB, 2, D]; both stores start at lane offset 0."""
    x = x_ref[...]                                   # [TB, D]
    p0, p1, p2, p3 = p_ref[0], p_ref[1], p_ref[2], p_ref[3]
    base = x * p0 + (x * x) * p1
    o_ref[:, 0, :] = p2 * base
    o_ref[:, 1, :] = p3 * base


# ----------------------------------------------------------------------------
# Wrapper
# ----------------------------------------------------------------------------
def _round_up(v, m):
    return ((v + m - 1) // m) * m


def _vmem_capacity_bytes():
    """Physical VMEM per TensorCore; conservative fallback if the query fails."""
    try:
        info = pltpu.get_tpu_info()
        cap = getattr(info, "vmem_capacity_bytes", None)
        if cap:
            return int(cap)
    except Exception:
        pass
    return 64 << 20  # v7x per-TC VMEM (smallest of the three generations)


def toy_model_forward(p, x):
    """Pallas implementation of ToyModel.forward for x of shape [B, D]."""
    B, D = x.shape
    itemsize = jnp.dtype(x.dtype).itemsize
    bytes_per_row = 3 * D * itemsize                 # x row + 2*D output row

    # --- block-row sizing from the per-generation VMEM budget ----------------
    vmem_cap = _vmem_capacity_bytes()
    budget = (3 * vmem_cap) // 4                     # ~48 MiB v7x, ~96 MiB v5e/v6e
    rows_vmem = max(8, budget // (2 * bytes_per_row))  # double-buffered x + o
    tb = min(B, rows_vmem)
    if tb != B:
        tb = max(8, (tb // 8) * 8)                   # sublane multiple when tiled

    # --- megacore: guarantee >= 2 grid steps (up to 8 while blocks stay big) --
    if B >= 16:
        min_rows = max(8, _round_up((1 << 20) // max(1, D * itemsize), 8))
        chosen = None
        for steps in (8, 4, 2):
            cand = _round_up(pl.cdiv(B, steps), 8)
            if cand >= min_rows:
                chosen = cand
                break
        if chosen is None:
            chosen = _round_up(pl.cdiv(B, 2), 8)     # at least 2 steps
        tb = min(tb, chosen)

    grid = (pl.cdiv(B, tb),)

    # --- explicit scoped-VMEM limit: double-buffered blocks + ~25% headroom ---
    block_bytes = tb * bytes_per_row
    vmem_limit = min(int(2 * block_bytes * 1.25) + (1 << 20), vmem_cap)

    cost = pl.CostEstimate(
        flops=6 * B * D,
        transcendentals=0,
        bytes_accessed=3 * B * D * itemsize,
    )

    lane_aligned = (D % 128 == 0)
    if lane_aligned:
        out_shape = jax.ShapeDtypeStruct((B, 2 * D), x.dtype)
        out_spec = pl.BlockSpec((tb, 2 * D), lambda i: (i, 0))
        kernel = functools.partial(_toy_kernel_aligned, d=D)
    else:
        # Lane-dense stores for any D; free contiguous reshape afterwards.
        out_shape = jax.ShapeDtypeStruct((B, 2, D), x.dtype)
        out_spec = pl.BlockSpec((tb, 2, D), lambda i: (i, 0, 0))
        kernel = _toy_kernel_split

    out = pl.pallas_call(
        kernel,
        out_shape=out_shape,
        grid=grid,
        in_specs=[
            pl.BlockSpec(memory_space=pltpu.SMEM),       # p: 4 scalars, untiled
            pl.BlockSpec((tb, D), lambda i: (i, 0)),     # x: batch-tiled, VMEM
        ],
        out_specs=out_spec,
        compiler_params=pltpu.CompilerParams(
            dimension_semantics=("parallel",),           # megacore-shardable axis
            vmem_limit_bytes=vmem_limit,
        ),
        cost_estimate=cost,
    )(p, x)

    if not lane_aligned:
        # Row-major (B, 2, D) -> (B, 2*D) is exactly the concat([... , ...], -1)
        # layout; contiguous reshape, no data movement.
        out = out.reshape(B, 2 * D)
    # Note: for very small D (e.g. D=1) a batch->lane fold would recover lane
    # utilization, but it needs a wrapper-side transpose of the output; skipped
    # since that shape is launch-overhead-dominated anyway.
    return out


def toy_model_forward_ref(p, x):
    """Pure-JAX reference mirroring the PyTorch module exactly."""
    base = x * p[0] + x ** 2 * p[1]
    return jnp.concatenate([p[2] * base, p[3] * base], axis=-1)


if __name__ == "__main__":
    key = jax.random.PRNGKey(0)
    kp, kx1, kx2, kx3 = jax.random.split(key, 4)

    # rand_init=True -> p ~ U[0, 1) of shape (4,), deterministic via PRNGKey(0)
    p = jax.random.uniform(kp, (4,), dtype=jnp.float32)

    # Lane-aligned case (D % 128 == 0): exercises the 2-D output / >=2-step grid path.
    x_big = jax.random.uniform(kx1, (512, 128), dtype=jnp.float32)
    out_big = jax.block_until_ready(toy_model_forward(p, x_big))
    ref_big = toy_model_forward_ref(p, x_big)
    assert out_big.shape == (512, 256), out_big.shape
    assert jnp.allclose(out_big, ref_big, atol=1e-6, rtol=1e-6), "mismatch (512,128)"

    # Non-128-multiple D: exercises the lane-dense [B, 2, D] output path.
    x_mid = jax.random.uniform(kx2, (64, 96), dtype=jnp.float32)
    out_mid = jax.block_until_ready(toy_model_forward(p, x_mid))
    ref_mid = toy_model_forward_ref(p, x_mid)
    assert out_mid.shape == (64, 192), out_mid.shape
    assert jnp.allclose(out_mid, ref_mid, atol=1e-6, rtol=1e-6), "mismatch (64,96)"

    # Tiny scalar-feature case matching the original torch test usage ([B, 1]).
    x_small = jax.random.uniform(kx3, (8, 1), dtype=jnp.float32)
    out_small = jax.block_until_ready(toy_model_forward(p, x_small))
    ref_small = toy_model_forward_ref(p, x_small)
    assert out_small.shape == (8, 2), out_small.shape
    assert jnp.allclose(out_small, ref_small, atol=1e-6, rtol=1e-6), "mismatch (8,1)"

    print("KERNEL_OK")
</pallas_src>

<mosaic_0001>
module attributes {stable_mosaic.version = 11 : i64} {
  func.func @_toy_kernel_aligned(%arg0: i32, %arg1: memref<4xf32, #tpu.memory_space<smem>>, %arg2: memref<256x128xf32, #tpu.memory_space<vmem>>, %arg3: memref<256x256xf32, #tpu.memory_space<vmem>>) attributes {dimension_semantics = [#tpu.dimension_semantics<parallel>], iteration_bounds = array<i64: 2>, scalar_prefetch = 0 : i64, scratch_operands = 0 : i64, tpu.core_type = #tpu.core_type<tc>, window_params = [{transform_indices = @transform_0, window_bounds = array<i64: 4>}, {transform_indices = @transform_1, window_bounds = array<i64: 256, 128>}, {transform_indices = @transform_2, window_bounds = array<i64: 256, 256>}]} {
    %c0 = arith.constant 0 : index
    %c0_0 = arith.constant 0 : index
    %0 = vector.load %arg2[%c0, %c0_0] : memref<256x128xf32, #tpu.memory_space<vmem>>, vector<256x128xf32>
    %c0_1 = arith.constant 0 : index
    %1 = memref.load %arg1[%c0_1] : memref<4xf32, #tpu.memory_space<smem>>
    %c1 = arith.constant 1 : index
    %2 = memref.load %arg1[%c1] : memref<4xf32, #tpu.memory_space<smem>>
    %c2 = arith.constant 2 : index
    %3 = memref.load %arg1[%c2] : memref<4xf32, #tpu.memory_space<smem>>
    %c3 = arith.constant 3 : index
    %4 = memref.load %arg1[%c3] : memref<4xf32, #tpu.memory_space<smem>>
    %5 = vector.broadcast %1 : f32 to vector<256x128xf32>
    %6 = arith.mulf %0, %5 : vector<256x128xf32>
    %7 = arith.mulf %0, %0 : vector<256x128xf32>
    %8 = vector.broadcast %2 : f32 to vector<256x128xf32>
    %9 = arith.mulf %7, %8 : vector<256x128xf32>
    %10 = arith.addf %6, %9 : vector<256x128xf32>
    %11 = vector.broadcast %3 : f32 to vector<256x128xf32>
    %12 = arith.mulf %11, %10 : vector<256x128xf32>
    %c0_2 = arith.constant 0 : index
    %c0_3 = arith.constant 0 : index
    %13 = vector.load %arg3[%c0_2, %c0_3] : memref<256x256xf32, #tpu.memory_space<vmem>>, vector<256x128xf32>
    tpu.vector_store %arg3[%c0_2, %c0_3], %12 {strides = array<i32>} : memref<256x256xf32, #tpu.memory_space<vmem>>, vector<256x128xf32>,
    %14 = vector.broadcast %4 : f32 to vector<256x128xf32>
    %15 = arith.mulf %14, %10 : vector<256x128xf32>
    %c0_4 = arith.constant 0 : index
    %c128 = arith.constant 128 : index
    %16 = vector.load %arg3[%c0_4, %c128] : memref<256x256xf32, #tpu.memory_space<vmem>>, vector<256x128xf32>
    tpu.vector_store %arg3[%c0_4, %c128], %15 {strides = array<i32>} : memref<256x256xf32, #tpu.memory_space<vmem>>, vector<256x128xf32>,
    return
  }
  func.func @transform_0(%arg0: i32) -> i32 {
    %c0_i32 = arith.constant 0 : i32
    %c0_i32_0 = arith.constant 0 : i32
    return %c0_i32 : i32
  }
  func.func @transform_1(%arg0: i32) -> (i32, i32) {
    %c0_i32 = arith.constant 0 : i32
    %c0_i32_0 = arith.constant 0 : i32
    return %arg0, %c0_i32 : i32, i32
  }
  func.func @transform_2(%arg0: i32) -> (i32, i32) {
    %c0_i32 = arith.constant 0 : i32
    %c0_i32_0 = arith.constant 0 : i32
    return %arg0, %c0_i32 : i32, i32
  }
}

</mosaic_0001>

<bundles_post_ra>
// kernel: tpu_custom_call.1
= control target key start
LH: loop header
LB: loop body
LE: loop exit
PB: predicated region body
PF: predicated region fallthrough
CT: control target
= control target key end

     0   :  { %7 = vsyncpa [#allocation5], 0  ;;  %s1372_s0 = inlined_call_operand.hbm [shape: f32[4], index: 0, kind: input, shape index: {}]   ;;  %s1373_s1 = inlined_call_operand.hbm [shape: f32[512,128], index: 1, kind: input, shape index: {}]   ;;  %s1374_s2 = inlined_call_operand.hbm [shape: f32[512,256], index: 2, kind: output, shape index: {}]  }
   0x1   :  { %8 = vsyncpa [#allocation3], 0 }
   0x2   :  { %10 = vsyncpa [#allocation3 + $0x1], 0 }
   0x3   :  { %11 = vsyncpa [#allocation4], 0 }
   0x4   :  { %13 = vsyncpa [#allocation4 + $0x1], 0  ;;  %s799_s9 = smov 0   ;;  %s801_s10 = smov 0  }
   0x5   :  { %s803_s11 = smov 0   ;;  %s805_s12 = smov 0  }
   0x6 LB: > { %s820_s13 = sadd.s32 4294967295, %s777_s12   ;;  %s578_s14 = sadd.s32 4294967294, %s777_s12   ;;  %s777_s12 = sphi %s805_s12, %s1385_s12   ;;  %s773_s11 = sphi %s803_s11, %s1384_s11   ;;  %s769_s10 = sphi %s801_s10, %s1383_s10   ;;  %s765_s9 = sphi %s799_s9, %s1382_s9  }
   0x7   : > { %s824_s15 = sadd.s32 1, %s777_s12   ;;  %s47_s16 = sadd.s32 1, %s773_s11 }
   0x8   : > { %s44_s17 = ssub.s32 %s777_s12, %s824_s15  ;;  %p54_p0 = scmp.ne.s32.totalorder %s773_s11, %s769_s10 }
   0x9   : > { %p45_p1 = scmp.eq.s32.totalorder %s44_s17, 0  ;;  %p55_p2 = scmp.eq.s32.totalorder %s777_s12, 0 }
   0xa   : > { %p60_p3 = scmp.ne.s32.totalorder %s769_s10, %s765_s9  ;;  %p61_p4 = scmp.eq.s32.totalorder %s820_s13, 0 }
   0xb   : > { %s836_s18 = scalar_select %p45_p1, %s773_s11, %s47_s16  }
   0xc   : > { %p838_p5 = por %p55_p2, %p54_p0  ;;  %p844_p6 = por %p61_p4, %p60_p3 }
   0xd   : > { %p84_p7 = scmp.eq.s32.totalorder %s820_s13, 1  ;;  %p90_p8 = scmp.eq.s32.totalorder %s578_s14, 1 }
   0xe   : > { %p579_p9 = scmp.ge.s32.totalorder %s777_s12, 1  ;;  %p97_p10 = scmp.lt.s32.totalorder %s777_s12, 3 }
   0xf   : > { %p851_p11 = por %p84_p7, %p54_p0  ;;  %p855_p12 = por %p90_p8, %p60_p3 }
  0x10   : > { %p859_p13 = pnand %p579_p9, %p97_p10  ;;  %s109_s26 = sshll.u32 %s1372_s0, 4  ;;  %s110_s26 = int_to_ptr.hbm [resolvable:$true] %s109_s26 }
  0x11   : > { %p622_p2 = scmp.lt.s32.totalorder %s777_s12, 2  ;;  %s120_s27 = sand.u32 1, %s773_s11  }
  0x12   : > { %p609_p1 = pneg %p859_p13  ;;  %s582_s29 = sshll.u32 %s120_s27, 8 }
  0x13   : > { %p875_p3 = pnand %p622_p2, %p838_p5  ;;  %s779_s30 = smov [#allocation2]  }
  0x14   : > { %p610_p7 = pnand %p609_p1, %p61_p4  ;;  %s598_s3 = sshll.u32 %s777_s12, 8 }
  0x15   : > { %s124_s4 = scalar_lea.vmem [#allocation6], %s582_s29  ;;  %s129_s8 = scalar_lea.hbm %s1373_s1, %s598_s3 }
  0x16   : > { %612 = dma.hbm_to_smem (!%p610_p7), %s110_s26, 16, %s779_s30, [#allocation5]  }
  0x17   : > { %s132_s5 = sshll.u32 %s124_s4, 4  ;;  %s130_s14 = sshll.u32 %s129_s8, 4  ;;  %s133_s5 = int_to_ptr.vmem [resolvable:$true] %s132_s5  ;;  %s131_s14 = int_to_ptr.hbm [resolvable:$true] %s130_s14 }
  0x18   : > { %s121_s16 = scalar_lea.sflag [#allocation3], %s120_s27  ;;  %s677_s17 = sshra.s32 %s131_s14, 4  ;;  %s678_s17 = int_to_ptr.hbm [resolvable:$true] %s677_s17 }
  0x19   : > { %s679_s19 = scalar_lea.hbm %s678_s17, 256  ;;  %p681_p8 = pneg %p875_p3 }
  0x1a   : > { %p680_p5 = scmp.ne.s32.totalorder %s678_s17, %s679_s19  ;;  %s684_s26 = scalar_lea.hbm %s1373_s1, 512 }
  0x1b   : > { %p685_p1 = scmp.lt.s32.totalorder %s678_s17, %s1373_s1  ;;  %p686_p2 = scmp.lt.s32.totalorder %s684_s26, %s679_s19 }
  0x1c   : > { %p682_p9 = pnand %p681_p8, %p680_p5 }
  0x1d   : > { %p687_p7 = por %p686_p2, %p685_p1 }
  0x1e   : > { %p683_p10 = pneg %p682_p9 }
  0x20   : > { %p688_p0 = pnand %p687_p7, %p683_p10 }
  0x22   : > { %691 = shalt.err (!%p688_p0)
}
  0x23   : > { %s780_s27 = smov 128   ;;  %s781_s3 = smov 8  }
  0x24   : > { %616 = dma.hbm_to_vmem [thread:$0]  (!%p875_p3), %s131_s14, 4096, %s133_s5, %s121_s16, %s780_s27, %s780_s27, %s781_s3  }
  0x25   : > { %144 = sbr.rel (%p859_p13) target bundleno = 132 (0x84), region = 28 }
  0x2a   : > { %752 = dma.done.wait (%p61_p4), [#allocation5], 16  }
  0x2b   : > { %754 = vsyncadd (%p61_p4), [#allocation5], 4294967280  ;;  %s900_s4 = sand.u32 1, %s769_s10  }
  0x2c   : > { %s587_s6 = sshll.u32 %s900_s4, 8  ;;  %s152_s7 = scalar_lea.sflag [#allocation3], %s900_s4 }
  0x2d   : > { %s904_s8 = scalar_lea.vmem [#allocation6], %s587_s6 }
  0x2e   : > { %756 = dma.done.wait (%p844_p6), %s152_s7, 4096  }
  0x2f   : > { %758 = vsyncadd (%p844_p6), %s152_s7, 4294963200 }
  0x30   : > { %161 = sfence }
  0x31   : > { %v180_v0 = vld [vmem:[%s904_s8] sm:$0xff]  ;;  %s911_s23 = sld [smem:[#allocation2]]  ;;  %v181_v1 = vld [vmem:[%s904_s8 + $0x8] sm:$0xff]  ;;  %v182_v2 = vld [vmem:[%s904_s8 + $0x10] sm:$0xff]  ;;  %s588_s5 = sshll.u32 %s900_s4, 9 }
  0x32   : > { %s915_s28 = sld [smem:[#allocation2 + $0x1]]  ;;  %v183_v3 = vld [vmem:[%s904_s8 + $0x18] sm:$0xff]  ;;  %v184_v4 = vld [vmem:[%s904_s8 + $0x20] sm:$0xff]  ;;  %v185_v5 = vld [vmem:[%s904_s8 + $0x28] sm:$0xff]  ;;  %v249_v6 = vmul.f32 %v180_v0, %v180_v0  ;;  %v250_v7 = vmul.f32 %v181_v1, %v181_v1  ;;  %v251_v8 = vmul.f32 %v182_v2, %v182_v2  ;;  %s1021_s14 = scalar_lea.vmem [#allocation7], %s588_s5 }
  0x33   : > { %s920_s20 = sld [smem:[#allocation2 + $0x2]]  ;;  %v186_v9 = vld [vmem:[%s904_s8 + $0x30] sm:$0xff]  ;;  %v187_v10 = vld [vmem:[%s904_s8 + $0x38] sm:$0xff]  ;;  %v188_v11 = vld [vmem:[%s904_s8 + $0x40] sm:$0xff]  ;;  %v252_v12 = vmul.f32 %v183_v3, %v183_v3  ;;  %v253_v13 = vmul.f32 %v184_v4, %v184_v4  ;;  %v254_v14 = vmul.f32 %v185_v5, %v185_v5  ;;  %s600_s17 = sshll.u32 %s820_s13, 9 }
  0x34   : > { %v255_v15 = vmul.f32 %v186_v9, %v186_v9  ;;  %v189_v16 = vld [vmem:[%s904_s8 + $0x48] sm:$0xff]  ;;  %v190_v17 = vld [vmem:[%s904_s8 + $0x50] sm:$0xff]  ;;  %v928_v18 = vld [vmem:[%s904_s8 + $0x58] sm:$0xff]  ;;  %v256_v19 = vmul.f32 %v187_v10, %v187_v10  ;;  %v257_v20 = vmul.f32 %v188_v11, %v188_v11  ;;  %s1174_s16 = sld [smem:[#allocation2 + $0x3]]  ;;  %s489_s25 = scalar_lea.hbm %s1374_s2, %s600_s17 }
  0x35   : > { %v258_v21 = vmul.f32 %v189_v16, %v189_v16  ;;  %v259_v22 = vmul.f32 %v190_v17, %v190_v17  ;;  %v931_v23 = vld [vmem:[%s904_s8 + $0x60] sm:$0xff]  ;;  %v934_v24 = vld [vmem:[%s904_s8 + $0x68] sm:$0xff]  ;;  %v937_v25 = vld [vmem:[%s904_s8 + $0x70] sm:$0xff]  ;;  %v260_v26 = vmul.f32 %v928_v18, %v928_v18  ;;  %s490_s13 = sshll.u32 %s1021_s14, 4  ;;  %s492_s26 = sshll.u32 %s489_s25, 4  ;;  %s491_s13 = int_to_ptr.vmem [resolvable:$true] %s490_s13  ;;  %s493_s26 = int_to_ptr.hbm [resolvable:$true] %s492_s26 }
  0x36   : > { %v943_v27 = vmul.f32 %v931_v23, %v931_v23  ;;  %v947_v28 = vmul.f32 %v934_v24, %v934_v24  ;;  %v951_v29 = vmul.f32 %v937_v25, %v937_v25  ;;  %v954_v30 = vld [vmem:[%s904_s8 + $0x78] sm:$0xff]  ;;  %v957_v31 = vld [vmem:[%s904_s8 + $0x80] sm:$0xff]  ;;  %v960_v32 = vld [vmem:[%s904_s8 + $0x88] sm:$0xff]  ;;  %s477_s29 = scalar_lea.sflag [#allocation4], %s900_s4  ;;  %s721_s30 = sshra.s32 %s493_s26, 4  ;;  %s722_s30 = int_to_ptr.hbm [resolvable:$true] %s721_s30 }
  0x37   : > { %v963_v33 = vstv %s911_s23  ;;  %v967_v34 = vmul.f32 %v954_v30, %v954_v30  ;;  %v971_v35 = vmul.f32 %v957_v31, %v957_v31  ;;  %v975_v36 = vmul.f32 %v960_v32, %v960_v32  ;;  %s723_s27 = scalar_lea.hbm %s722_s30, 512  ;;  %s727_s7 = scalar_lea.hbm %s1374_s2, 1024 }
  0x38   : > { %v217_v37 = vmul.f32 %v963_v33, %v180_v0  ;;  %v979_v38 = vstv %s915_s28  ;;  %v218_v39 = vmul.f32 %v963_v33, %v181_v1  ;;  %v219_v40 = vmul.f32 %v963_v33, %v182_v2  ;;  %p724_p4 = scmp.ne.s32.totalorder %s722_s30, %s723_s27  ;;  %p728_p0 = scmp.lt.s32.totalorder %s722_s30, %s1374_s2 }
  0x39   : > { %v282_v41 = vmul.f32 %v979_v38, %v249_v6  ;;  %v986_v42 = vstv %s920_s20  ;;  %v283_v43 = vmul.f32 %v979_v38, %v250_v7  ;;  %v284_v44 = vmul.f32 %v979_v38, %v251_v8  ;;  %p729_p3 = scmp.lt.s32.totalorder %s727_s7, %s723_s27 }
  0x3a   : > { %v220_v45 = vmul.f32 %v963_v33, %v183_v3  ;;  %v285_v46 = vmul.f32 %v979_v38, %v252_v12  ;;  %v221_v47 = vmul.f32 %v963_v33, %v184_v4  ;;  %v286_v48 = vmul.f32 %v979_v38, %v253_v13  ;;  %p725_p6 = pnand %p724_p4, %p851_p11 }
  0x3b   : > { %v994_v49 = vadd.f32 %v282_v41, %v217_v37  ;;  %v996_v50 = vadd.f32 %v283_v43, %v218_v39  ;;  %v998_v51 = vadd.f32 %v284_v44, %v219_v40  ;;  %v222_v52 = vmul.f32 %v963_v33, %v185_v5  ;;  %v198_v44 = vld [vmem:[%s904_s8 + $0x90] sm:$0xff]  ;;  %p730_p5 = por %p729_p3, %p728_p0 }
  0x3c   : > { %v1001_v53 = vadd.f32 %v285_v46, %v220_v45  ;;  %v1003_v54 = vadd.f32 %v286_v48, %v221_v47  ;;  %v287_v55 = vmul.f32 %v979_v38, %v254_v14  ;;  %v223_v56 = vmul.f32 %v963_v33, %v186_v9  ;;  %v199_v47 = vld [vmem:[%s904_s8 + $0x98] sm:$0xff]  ;;  %p726_p13 = pneg %p725_p6 }
  0x3d   : > { %v347_v57 = vmul.f32 %v986_v42, %v994_v49  ;;  %v348_v58 = vmul.f32 %v986_v42, %v996_v50  ;;  %v349_v59 = vmul.f32 %v986_v42, %v998_v51  ;;  %v288_v60 = vmul.f32 %v979_v38, %v255_v15 }
  0x3e   : > { %v350_v61 = vmul.f32 %v986_v42, %v1001_v53  ;;  %v351_v62 = vmul.f32 %v986_v42, %v1003_v54  ;;  %v1018_v63 = vadd.f32 %v287_v55, %v222_v52  ;;  %v224_v0 = vmul.f32 %v963_v33, %v187_v10  ;;  %v200_v55 = vld [vmem:[%s904_s8 + $0xa0] sm:$0xff]  ;;  %p731_p8 = pnand %p730_p5, %p726_p13 }
  0x3f   : > { %379 = vst [vmem:[%s1021_s14] sm:$0xff] %v347_v57  ;;  %v1024_v1 = vadd.f32 %v288_v60, %v223_v56  ;;  %v289_v2 = vmul.f32 %v979_v38, %v256_v19  ;;  %v225_v3 = vmul.f32 %v963_v33, %v188_v11  ;;  %v290_v4 = vmul.f32 %v979_v38, %v257_v20 }
  0x40   : > { %380 = vst [vmem:[%s1021_s14 + $0x10] sm:$0xff] %v348_v58  ;;  %v352_v5 = vmul.f32 %v986_v42, %v1018_v63  ;;  %v226_v6 = vmul.f32 %v963_v33, %v189_v16  ;;  %v291_v7 = vmul.f32 %v979_v38, %v258_v21  ;;  %v227_v8 = vmul.f32 %v963_v33, %v190_v17  ;;  %v201_v58 = vld [vmem:[%s904_s8 + $0xa8] sm:$0xff] }
  0x41   : > { %381 = vst [vmem:[%s1021_s14 + $0x20] sm:$0xff] %v349_v59  ;;  %v353_v9 = vmul.f32 %v986_v42, %v1024_v1  ;;  %v1038_v10 = vadd.f32 %v289_v2, %v224_v0  ;;  %v1040_v11 = vadd.f32 %v290_v4, %v225_v3  ;;  %v292_v12 = vmul.f32 %v979_v38, %v259_v22  ;;  %v203_v4 = vld [vmem:[%s904_s8 + $0xb8] sm:$0xff] }
  0x42   : > { %382 = vst [vmem:[%s1021_s14 + $0x30] sm:$0xff] %v350_v61  ;;  %v1044_v13 = vadd.f32 %v291_v7, %v226_v6  ;;  %v228_v14 = vmul.f32 %v963_v33, %v928_v18  ;;  %v293_v15 = vmul.f32 %v979_v38, %v260_v26  ;;  %v229_v16 = vmul.f32 %v963_v33, %v931_v23  ;;  %v202_v61 = vld [vmem:[%s904_s8 + $0xb0] sm:$0xff] }
  0x43   : > { %383 = vst [vmem:[%s1021_s14 + $0x40] sm:$0xff] %v351_v62  ;;  %v354_v17 = vmul.f32 %v986_v42, %v1038_v10  ;;  %v355_v19 = vmul.f32 %v986_v42, %v1040_v11  ;;  %v1056_v20 = vadd.f32 %v292_v12, %v227_v8  ;;  %v294_v21 = vmul.f32 %v979_v38, %v943_v27 }
  0x44   : > { %384 = vst [vmem:[%s1021_s14 + $0x50] sm:$0xff] %v352_v5  ;;  %v356_v18 = vmul.f32 %v986_v42, %v1044_v13  ;;  %v1063_v22 = vadd.f32 %v293_v15, %v228_v14  ;;  %v230_v23 = vmul.f32 %v963_v33, %v934_v24  ;;  %v295_v26 = vmul.f32 %v979_v38, %v947_v28 }
  0x45   : > { %385 = vst [vmem:[%s1021_s14 + $0x60] sm:$0xff] %v353_v9  ;;  %v357_v37 = vmul.f32 %v986_v42, %v1056_v20  ;;  %v1072_v27 = vadd.f32 %v294_v21, %v229_v16  ;;  %v231_v39 = vmul.f32 %v963_v33, %v937_v25  ;;  %v296_v40 = vmul.f32 %v979_v38, %v951_v29  ;;  %v204_v16 = vld [vmem:[%s904_s8 + $0xc0] sm:$0xff] }
  0x46   : > { %386 = vst [vmem:[%s1021_s14 + $0x70] sm:$0xff] %v354_v17  ;;  %v358_v24 = vmul.f32 %v986_v42, %v1063_v22  ;;  %v1081_v28 = vadd.f32 %v295_v26, %v230_v23  ;;  %v232_v41 = vmul.f32 %v963_v33, %v954_v30  ;;  %v297_v43 = vmul.f32 %v979_v38, %v967_v34  ;;  %v205_v23 = vld [vmem:[%s904_s8 + $0xc8] sm:$0xff] }
  0x47   : > { %387 = vst [vmem:[%s1021_s14 + $0x80] sm:$0xff] %v355_v19  ;;  %v359_v25 = vmul.f32 %v986_v42, %v1072_v27  ;;  %v1091_v29 = vadd.f32 %v296_v40, %v231_v39  ;;  %v233_v45 = vmul.f32 %v963_v33, %v957_v31  ;;  %v298_v46 = vmul.f32 %v979_v38, %v971_v35 }
  0x48   : > { %388 = vst [vmem:[%s1021_s14 + $0x90] sm:$0xff] %v356_v18  ;;  %v360_v30 = vmul.f32 %v986_v42, %v1081_v28  ;;  %v1101_v34 = vadd.f32 %v297_v43, %v232_v41  ;;  %v234_v48 = vmul.f32 %v963_v33, %v960_v32  ;;  %v299_v52 = vmul.f32 %v979_v38, %v975_v36 }
  0x49   : > { %389 = vst [vmem:[%s1021_s14 + $0xa0] sm:$0xff] %v357_v37  ;;  %v361_v31 = vmul.f32 %v986_v42, %v1091_v29  ;;  %v1111_v35 = vadd.f32 %v298_v46, %v233_v45  ;;  %v235_v56 = vmul.f32 %v963_v33, %v198_v44  ;;  %v267_v57 = vmul.f32 %v198_v44, %v198_v44 }
  0x4a   : > { %390 = vst [vmem:[%s1021_s14 + $0xb0] sm:$0xff] %v358_v24  ;;  %v362_v32 = vmul.f32 %v986_v42, %v1101_v34  ;;  %v1118_v59 = vadd.f32 %v299_v52, %v234_v48  ;;  %v236_v36 = vmul.f32 %v963_v33, %v199_v47  ;;  %v268_v60 = vmul.f32 %v199_v47, %v199_v47  ;;  %v207_v48 = vld [vmem:[%s904_s8 + $0xd8] sm:$0xff] }
  0x4b   : > { %391 = vst [vmem:[%s1021_s14 + $0xc0] sm:$0xff] %v359_v25  ;;  %v363_v62 = vmul.f32 %v986_v42, %v1111_v35  ;;  %v300_v0 = vmul.f32 %v979_v38, %v267_v57  ;;  %v237_v2 = vmul.f32 %v963_v33, %v200_v55  ;;  %v269_v3 = vmul.f32 %v200_v55, %v200_v55  ;;  %v206_v25 = vld [vmem:[%s904_s8 + $0xd0] sm:$0xff]  ;;  %v208_v57 = vld [vmem:[%s904_s8 + $0xe0] sm:$0xff] }
  0x4c   : > { %392 = vst [vmem:[%s1021_s14 + $0xd0] sm:$0xff] %v360_v30  ;;  %v364_v5 = vmul.f32 %v986_v42, %v1118_v59  ;;  %v301_v6 = vmul.f32 %v979_v38, %v268_v60  ;;  %v238_v7 = vmul.f32 %v963_v33, %v201_v58  ;;  %v270_v8 = vmul.f32 %v201_v58, %v201_v58 }
  0x4d   : > { %393 = vst [vmem:[%s1021_s14 + $0xe0] sm:$0xff] %v361_v31  ;;  %v1134_v9 = vadd.f32 %v300_v0, %v235_v56  ;;  %v302_v12 = vmul.f32 %v979_v38, %v269_v3  ;;  %v239_v14 = vmul.f32 %v963_v33, %v202_v61  ;;  %v271_v15 = vmul.f32 %v202_v61, %v202_v61  ;;  %v209_v61 = vld [vmem:[%s904_s8 + $0xe8] sm:$0xff] }
  0x4e   : > { %394 = vst [vmem:[%s1021_s14 + $0xf0] sm:$0xff] %v362_v32  ;;  %v1140_v17 = vadd.f32 %v301_v6, %v236_v36  ;;  %v303_v19 = vmul.f32 %v979_v38, %v270_v8  ;;  %v240_v21 = vmul.f32 %v963_v33, %v203_v4  ;;  %v272_v18 = vmul.f32 %v203_v4, %v203_v4  ;;  %v210_v4 = vld [vmem:[%s904_s8 + $0xf0] sm:$0xff] }
  0x4f   : > { %395 = vst [vmem:[%s1021_s14 + $0x100] sm:$0xff] %v363_v62  ;;  %v365_v26 = vmul.f32 %v986_v42, %v1134_v9  ;;  %v1148_v37 = vadd.f32 %v302_v12, %v237_v2  ;;  %v304_v39 = vmul.f32 %v979_v38, %v271_v15  ;;  %v241_v40 = vmul.f32 %v963_v33, %v204_v16  ;;  %v211_v12 = vld [vmem:[%s904_s8 + $0xf8] sm:$0xff] }
  0x50   : > { %396 = vst [vmem:[%s1021_s14 + $0x110] sm:$0xff] %v364_v5  ;;  %v366_v24 = vmul.f32 %v986_v42, %v1140_v17  ;;  %v1155_v41 = vadd.f32 %v303_v19, %v238_v7  ;;  %v305_v43 = vmul.f32 %v979_v38, %v272_v18  ;;  %v273_v44 = vmul.f32 %v204_v16, %v204_v16 }
  0x51   : > { %397 = vst [vmem:[%s1021_s14 + $0x120] sm:$0xff] %v365_v26  ;;  %v367_v45 = vmul.f32 %v986_v42, %v1148_v37  ;;  %v1162_v46 = vadd.f32 %v304_v39, %v239_v14  ;;  %v242_v47 = vmul.f32 %v963_v33, %v205_v23  ;;  %v274_v30 = vmul.f32 %v205_v23, %v205_v23 }
  0x52   : > { %398 = vst [vmem:[%s1021_s14 + $0x130] sm:$0xff] %v366_v24  ;;  %v368_v52 = vmul.f32 %v986_v42, %v1155_v41  ;;  %v1169_v55 = vadd.f32 %v305_v43, %v240_v21  ;;  %v306_v31 = vmul.f32 %v979_v38, %v273_v44  ;;  %v243_v56 = vmul.f32 %v963_v33, %v206_v25 }
  0x53   : > { %399 = vst [vmem:[%s1021_s14 + $0x140] sm:$0xff] %v367_v45  ;;  %v369_v58 = vmul.f32 %v986_v42, %v1162_v46  ;;  %v307_v32 = vmul.f32 %v979_v38, %v274_v30  ;;  %v275_v36 = vmul.f32 %v206_v25, %v206_v25  ;;  %v244_v60 = vmul.f32 %v963_v33, %v207_v48 }
  0x54   : > { %400 = vst [vmem:[%s1021_s14 + $0x150] sm:$0xff] %v368_v52  ;;  %v370_v62 = vmul.f32 %v986_v42, %v1169_v55  ;;  %v1185_v0 = vadd.f32 %v306_v31, %v241_v40  ;;  %v276_v2 = vmul.f32 %v207_v48, %v207_v48  ;;  %v245_v3 = vmul.f32 %v963_v33, %v208_v57 }
  0x55   : > { %401 = vst [vmem:[%s1021_s14 + $0x160] sm:$0xff] %v369_v58  ;;  %v1190_v5 = vadd.f32 %v307_v32, %v242_v47  ;;  %v308_v6 = vmul.f32 %v979_v38, %v275_v36  ;;  %v277_v7 = vmul.f32 %v208_v57, %v208_v57  ;;  %v246_v8 = vmul.f32 %v963_v33, %v209_v61 }
  0x56   : > { %402 = vst [vmem:[%s1021_s14 + $0x170] sm:$0xff] %v370_v62  ;;  %v371_v14 = vmul.f32 %v986_v42, %v1185_v0  ;;  %v309_v15 = vmul.f32 %v979_v38, %v276_v2  ;;  %v278_v16 = vmul.f32 %v209_v61, %v209_v61  ;;  %v247_v19 = vmul.f32 %v963_v33, %v210_v4 }
  0x57   : > { %v372_v21 = vmul.f32 %v986_v42, %v1190_v5  ;;  %v1202_v18 = vadd.f32 %v308_v6, %v243_v56  ;;  %v310_v23 = vmul.f32 %v979_v38, %v277_v7  ;;  %v279_v26 = vmul.f32 %v210_v4, %v210_v4 }
  0x58   : > { %403 = vst [vmem:[%s1021_s14 + $0x180] sm:$0xff] %v371_v14  ;;  %v1206_v39 = vadd.f32 %v309_v15, %v244_v60  ;;  %v311_v40 = vmul.f32 %v979_v38, %v278_v16  ;;  %v248_v24 = vmul.f32 %v963_v33, %v211_v12  ;;  %v280_v43 = vmul.f32 %v211_v12, %v211_v12 }
  0x59   : > { %404 = vst [vmem:[%s1021_s14 + $0x190] sm:$0xff] %v372_v21  ;;  %v373_v44 = vmul.f32 %v986_v42, %v1202_v18  ;;  %v1213_v25 = vadd.f32 %v310_v23, %v245_v3  ;;  %v312_v45 = vmul.f32 %v979_v38, %v279_v26  ;;  %v1222_v33 = vstv %s1174_s16 }
  0x5a   : > { %v374_v47 = vmul.f32 %v986_v42, %v1206_v39  ;;  %v1218_v30 = vadd.f32 %v311_v40, %v246_v8  ;;  %v313_v48 = vmul.f32 %v979_v38, %v280_v43  ;;  %v412_v58 = vmul.f32 %v1222_v33, %v994_v49 }
  0x5b   : > { %405 = vst [vmem:[%s1021_s14 + $0x1a0] sm:$0xff] %v373_v44  ;;  %v375_v52 = vmul.f32 %v986_v42, %v1213_v25  ;;  %v1227_v31 = vadd.f32 %v312_v45, %v247_v19  ;;  %v413_v36 = vmul.f32 %v1222_v33, %v996_v50  ;;  %v414_v60 = vmul.f32 %v1222_v33, %v998_v51 }
  0x5c   : > { %406 = vst [vmem:[%s1021_s14 + $0x1b0] sm:$0xff] %v374_v47  ;;  %v376_v56 = vmul.f32 %v986_v42, %v1218_v30  ;;  %v1232_v57 = vadd.f32 %v313_v48, %v248_v24  ;;  %v415_v61 = vmul.f32 %v1222_v33, %v1001_v53  ;;  %v416_v49 = vmul.f32 %v1222_v33, %v1003_v54 }
  0x5d   : > { %407 = vst [vmem:[%s1021_s14 + $0x1c0] sm:$0xff] %v375_v52  ;;  %v377_v38 = vmul.f32 %v986_v42, %v1227_v31  ;;  %v418_v50 = vmul.f32 %v1222_v33, %v1024_v1  ;;  %v419_v51 = vmul.f32 %v1222_v33, %v1038_v10  ;;  %v420_v53 = vmul.f32 %v1222_v33, %v1040_v11 }
  0x5e   : > { %408 = vst [vmem:[%s1021_s14 + $0x1d0] sm:$0xff] %v376_v56  ;;  %v378_v32 = vmul.f32 %v986_v42, %v1232_v57  ;;  %v417_v42 = vmul.f32 %v1222_v33, %v1018_v63  ;;  %v421_v54 = vmul.f32 %v1222_v33, %v1044_v13  ;;  %v422_v63 = vmul.f32 %v1222_v33, %v1056_v20 }
  0x5f   : > { %409 = vst [vmem:[%s1021_s14 + $0x1e0] sm:$0xff] %v377_v38  ;;  %v423_v1 = vmul.f32 %v1222_v33, %v1063_v22  ;;  %v424_v10 = vmul.f32 %v1222_v33, %v1072_v27  ;;  %v425_v11 = vmul.f32 %v1222_v33, %v1081_v28  ;;  %v426_v13 = vmul.f32 %v1222_v33, %v1091_v29 }
  0x60   : > { %410 = vst [vmem:[%s1021_s14 + $0x1f0] sm:$0xff] %v378_v32  ;;  %v427_v20 = vmul.f32 %v1222_v33, %v1101_v34  ;;  %v428_v22 = vmul.f32 %v1222_v33, %v1111_v35  ;;  %v429_v27 = vmul.f32 %v1222_v33, %v1118_v59  ;;  %v430_v28 = vmul.f32 %v1222_v33, %v1134_v9 }
  0x61   : > { %444 = vst [vmem:[%s1021_s14 + $0x8] sm:$0xff] %v412_v58  ;;  %v431_v29 = vmul.f32 %v1222_v33, %v1140_v17  ;;  %v432_v34 = vmul.f32 %v1222_v33, %v1148_v37  ;;  %v433_v35 = vmul.f32 %v1222_v33, %v1155_v41  ;;  %v434_v59 = vmul.f32 %v1222_v33, %v1162_v46 }
  0x62   : > { %445 = vst [vmem:[%s1021_s14 + $0x18] sm:$0xff] %v413_v36  ;;  %v435_v9 = vmul.f32 %v1222_v33, %v1169_v55  ;;  %v436_v17 = vmul.f32 %v1222_v33, %v1185_v0  ;;  %v437_v37 = vmul.f32 %v1222_v33, %v1190_v5  ;;  %v438_v41 = vmul.f32 %v1222_v33, %v1202_v18 }
  0x63   : > { %446 = vst [vmem:[%s1021_s14 + $0x28] sm:$0xff] %v414_v60  ;;  %v439_v46 = vmul.f32 %v1222_v33, %v1206_v39  ;;  %v440_v55 = vmul.f32 %v1222_v33, %v1213_v25  ;;  %v441_v62 = vmul.f32 %v1222_v33, %v1218_v30  ;;  %v442_v0 = vmul.f32 %v1222_v33, %v1227_v31 }
  0x64   : > { %447 = vst [vmem:[%s1021_s14 + $0x38] sm:$0xff] %v415_v61  ;;  %v443_v2 = vmul.f32 %v1222_v33, %v1232_v57 }
  0x65   : > { %448 = vst [vmem:[%s1021_s14 + $0x48] sm:$0xff] %v416_v49 }
  0x66   : > { %449 = vst [vmem:[%s1021_s14 + $0x58] sm:$0xff] %v417_v42 }
  0x67   : > { %450 = vst [vmem:[%s1021_s14 + $0x68] sm:$0xff] %v418_v50 }
  0x68   : > { %451 = vst [vmem:[%s1021_s14 + $0x78] sm:$0xff] %v419_v51 }
  0x69   : > { %452 = vst [vmem:[%s1021_s14 + $0x88] sm:$0xff] %v420_v53 }
  0x6a   : > { %453 = vst [vmem:[%s1021_s14 + $0x98] sm:$0xff] %v421_v54 }
  0x6b   : > { %454 = vst [vmem:[%s1021_s14 + $0xa8] sm:$0xff] %v422_v63 }
  0x6c   : > { %455 = vst [vmem:[%s1021_s14 + $0xb8] sm:$0xff] %v423_v1 }
  0x6d   : > { %456 = vst [vmem:[%s1021_s14 + $0xc8] sm:$0xff] %v424_v10 }
  0x6e   : > { %457 = vst [vmem:[%s1021_s14 + $0xd8] sm:$0xff] %v425_v11 }
  0x6f   : > { %458 = vst [vmem:[%s1021_s14 + $0xe8] sm:$0xff] %v426_v13 }
  0x70   : > { %459 = vst [vmem:[%s1021_s14 + $0xf8] sm:$0xff] %v427_v20 }
  0x71   : > { %460 = vst [vmem:[%s1021_s14 + $0x108] sm:$0xff] %v428_v22 }
  0x72   : > { %461 = vst [vmem:[%s1021_s14 + $0x118] sm:$0xff] %v429_v27 }
  0x73   : > { %462 = vst [vmem:[%s1021_s14 + $0x128] sm:$0xff] %v430_v28 }
  0x74   : > { %463 = vst [vmem:[%s1021_s14 + $0x138] sm:$0xff] %v431_v29 }
  0x75   : > { %464 = vst [vmem:[%s1021_s14 + $0x148] sm:$0xff] %v432_v34 }
  0x76   : > { %465 = vst [vmem:[%s1021_s14 + $0x158] sm:$0xff] %v433_v35 }
  0x77   : > { %466 = vst [vmem:[%s1021_s14 + $0x168] sm:$0xff] %v434_v59 }
  0x78   : > { %467 = vst [vmem:[%s1021_s14 + $0x178] sm:$0xff] %v435_v9 }
  0x79   : > { %468 = vst [vmem:[%s1021_s14 + $0x188] sm:$0xff] %v436_v17 }
  0x7a   : > { %469 = vst [vmem:[%s1021_s14 + $0x198] sm:$0xff] %v437_v37 }
  0x7b   : > { %470 = vst [vmem:[%s1021_s14 + $0x1a8] sm:$0xff] %v438_v41 }
  0x7c   : > { %471 = vst [vmem:[%s1021_s14 + $0x1b8] sm:$0xff] %v439_v46 }
  0x7d   : > { %472 = vst [vmem:[%s1021_s14 + $0x1c8] sm:$0xff] %v440_v55 }
  0x7e   : > { %473 = vst [vmem:[%s1021_s14 + $0x1d8] sm:$0xff] %v441_v62 }
  0x7f   : > { %474 = vst [vmem:[%s1021_s14 + $0x1e8] sm:$0xff] %v442_v0 }
  0x80   : > { %475 = vst [vmem:[%s1021_s14 + $0x1f8] sm:$0xff] %v443_v2 }
  0x81   : > { %734 = shalt.err (!%p731_p8)
}
  0x82   : > { %s782_s4 = smov 256   ;;  %s783_s28 = smov 16  }
  0x83   : > { %607 = dma.vmem_to_hbm [thread:$0]  (%p851_p11), %s491_s13, 8192, %s493_s26, %s477_s29, %s782_s4, %s782_s4, %s783_s28  }
  0x84 PF: > { %s507_s20 = sand.u32 1, %s765_s9   ;;  %p1381_p9 = scmp.ge.s32.totalorder %s777_s12, 2 }
  0x85   : > { %s508_s5 = scalar_lea.sflag [#allocation4], %s507_s20 }
  0x86   : > { %p618_p10 = pnand %p1381_p9, %p855_p12 }
  0x88   : > { %p619_p1 = pneg %p618_p10 }
  0x8a   : > { %760 = dma.done.wait (%p619_p1), %s508_s5, 8192  }
  0x8b   : > { %762 = vsyncadd (%p619_p1), %s508_s5, 4294959104  ;;  %p16_p2 = scmp.ge.s32.totalorder %s824_s15, 4   ;;  %s1382_s9 = smov %s769_s10 }
  0x8c   : > { %s1383_s10 = smov %s773_s11  ;;  %s1384_s11 = smov %s836_s18 }
  0x8d   : > { %s1385_s12 = smov %s824_s15  ;;  %18 = sbr.rel (!%p16_p2) target bundleno = 6 (0x6), region = 78 }
  0x92   :  { %514 = vsyncpa [#allocation3], 1 }
  0x93   :  { %516 = vsyncpa [#allocation3 + $0x1], 1 }
  0x94   :  { %517 = vsyncpa [#allocation4], 1 }
  0x95   :  { %519 = vsyncpa [#allocation4 + $0x1], 1 }
  0x96   :  { %520 = vsyncpa [#allocation5], 1 }
  0x97   :  { %522 = vsyncpa [#allocation5 + $0x1], 1 }

</bundles_post_ra>
